<compile_context>
chip_gen: v7x
topology: tpu7x:2x2x1
jax: 0.10.0
libtpu: 0.0.40
codegen_flags: <defaults>
</compile_context>

<pallas_src>
import functools

import jax
import jax.numpy as jnp
import numpy as np
from jax.experimental import pallas as pl
from jax.experimental.pallas import tpu as pltpu

NEG_SLOPE = 0.01   # nn.LeakyReLU default
LANE = 128         # packed-slab / output lane width
SUBLANE = 8        # f32 sublane tile


def templatenet_kernel(x_ref, w_ref, out_ref, *,
                       S, D, E, H,
                       r_wcat, r_bcat, r_wd2, r_bd2,
                       r_wl1, r_bl1, r_wl2, r_bl2):
    """One grid step = one batch element (S sequence rows)."""
    x = x_ref[...]                                        # (S, D)

    # Static, tile-aligned slices into the VMEM-resident parameter slab.
    wcat = w_ref[r_wcat:r_wcat + D, :E + H]               # (D, E+H)  fused base+disc1
    bcat = w_ref[r_bcat:r_bcat + 1, :E + H]               # (1, E+H)
    wd2  = w_ref[r_wd2:r_wd2 + 1, :H]                     # (1, H)    (= wd2.T)
    bd2  = w_ref[r_bd2:r_bd2 + 1, 0:1]                    # (1, 1)
    wl1  = w_ref[r_wl1:r_wl1 + E, :H]                     # (E, H)
    bl1  = w_ref[r_bl1:r_bl1 + 1, :H]                     # (1, H)
    wl2  = w_ref[r_wl2:r_wl2 + H, :]                      # (H, 128)  zero-padded cols
    bl2  = w_ref[r_bl2:r_bl2 + 1, :]                      # (1, 128)  zero-padded cols

    # One MXU op produces base preds (lanes 0..E-1) and the pre-activation of
    # the fused discriminator layer 1 (lanes E..E+H-1).
    y = jnp.dot(x, wcat, preferred_element_type=jnp.float32) + bcat       # (S, E+H)
    preds = y[:, :E]                                                      # (S, E)
    h = y[:, E:E + H]                                                     # (S, H)
    h = jnp.where(h > 0, h, NEG_SLOPE * h)

    # Discriminator layer 2 as a lane reduce (avoids an N=1 MXU op).
    d = jnp.sum(h * wd2, axis=-1, keepdims=True) + bd2                    # (S, 1)

    # softmax over the sequence dim (torch dim=1 == this block's row axis).
    m = jnp.max(d, axis=0, keepdims=True)
    e = jnp.exp(d - m)
    scores = e / jnp.sum(e, axis=0, keepdims=True)                        # (S, 1)

    # Weighted mean over the sequence dim.
    wm = jnp.sum(preds * scores, axis=0, keepdims=True)                   # (1, E)

    # Logits MLP; wl2/bl2 are zero-padded to 128 columns -> lane-dense result.
    h2 = jnp.dot(wm, wl1, preferred_element_type=jnp.float32) + bl1       # (1, H)
    h2 = jnp.where(h2 > 0, h2, NEG_SLOPE * h2)
    out = jnp.dot(h2, wl2, preferred_element_type=jnp.float32) + bl2      # (1, 128)

    # Full-sublane, unmasked store: broadcast the single result row over the
    # 8-sublane output tile; the wrapper reads row 0.
    out_ref[...] = jnp.broadcast_to(out, out_ref.shape).astype(out_ref.dtype)


def prepare_params(params):
    """Params-only precompute: run ONCE per parameter set, not per forward."""
    wb  = jnp.asarray(params['wb'],  jnp.float32)   # (D, E)
    bb  = jnp.asarray(params['bb'],  jnp.float32)   # (1, E)
    wd1 = jnp.asarray(params['wd1'], jnp.float32)   # (T, H)
    bd1 = jnp.asarray(params['bd1'], jnp.float32)   # (1, H)
    wd2 = jnp.asarray(params['wd2'], jnp.float32)   # (H, 1)
    bd2 = jnp.asarray(params['bd2'], jnp.float32)   # (1, 1)
    wl1 = jnp.asarray(params['wl1'], jnp.float32)   # (E, H)
    bl1 = jnp.asarray(params['bl1'], jnp.float32)   # (1, H)
    wl2 = jnp.asarray(params['wl2'], jnp.float32)   # (H, L)
    bl2 = jnp.asarray(params['bl2'], jnp.float32)   # (1, L)
    tmpl = jnp.asarray(params['templates'], jnp.float32)

    D, E = wb.shape
    H = wd1.shape[1]
    L = wl2.shape[1]
    assert E <= LANE and H <= LANE and L <= LANE and (E + H) <= LANE

    # Template path fused algebraically: sims @ wd1 == preds @ (temp_preds.T @ wd1)
    temp_preds = tmpl @ wb + bb                                   # (T, E)
    w_eff = temp_preds.T @ wd1                                    # (E, H)

    # Fuse base matmul and discriminator layer 1 into one MXU op.
    w_cat = jnp.concatenate([wb, wb @ w_eff], axis=1)             # (D, E+H)
    b_cat = jnp.concatenate([bb, bb @ w_eff + bd1], axis=1)       # (1, E+H)

    pieces = [
        ('wcat', w_cat),      # (D, E+H)
        ('bcat', b_cat),      # (1, E+H)
        ('wd2',  wd2.T),      # (1, H)
        ('bd2',  bd2),        # (1, 1)
        ('wl1',  wl1),        # (E, H)
        ('bl1',  bl1),        # (1, H)
        ('wl2',  wl2),        # (H, L) -> padded to 128 cols
        ('bl2',  bl2),        # (1, L) -> padded to 128 cols
    ]
    offs = {}
    rows = []
    r = 0
    for name, a in pieces:
        offs[name] = r
        nr = -(-a.shape[0] // SUBLANE) * SUBLANE          # round rows up to tile
        rows.append(jnp.pad(a, ((0, nr - a.shape[0]), (0, LANE - a.shape[1]))))
        r += nr
    slab = jnp.concatenate(rows, axis=0)                  # (R, 128), R % 8 == 0
    meta = dict(D=D, E=E, H=H, L=L, offs=offs)
    return slab, meta


def templatenet_forward(x, slab, meta):
    B, S, D = x.shape
    assert D == meta['D']
    assert S % SUBLANE == 0, "sequence length must be a multiple of 8 for the batch grid"
    E, H, L = meta['E'], meta['H'], meta['L']
    offs = meta['offs']

    x_flat = x.reshape(B * S, D).astype(jnp.float32)

    kernel = functools.partial(
        templatenet_kernel,
        S=S, D=D, E=E, H=H,
        r_wcat=offs['wcat'], r_bcat=offs['bcat'],
        r_wd2=offs['wd2'], r_bd2=offs['bd2'],
        r_wl1=offs['wl1'], r_bl1=offs['bl1'],
        r_wl2=offs['wl2'], r_bl2=offs['bl2'])

    out_padded = pl.pallas_call(
        kernel,
        out_shape=jax.ShapeDtypeStruct((B * SUBLANE, LANE), jnp.float32),
        grid=(B,),
        in_specs=[
            pl.BlockSpec((S, D), lambda b: (b, 0)),          # per-batch x tile
            pl.BlockSpec(slab.shape, lambda b: (0, 0)),      # VMEM-resident slab
        ],
        out_specs=pl.BlockSpec((SUBLANE, LANE), lambda b: (b, 0)),
        compiler_params=pltpu.CompilerParams(
            dimension_semantics=("parallel",)),
    )(x_flat, slab)

    # Row 0 of each 8-row output block holds that batch element's logits.
    return out_padded.reshape(B, SUBLANE, LANE)[:, 0, :L]    # (B, L)


def templatenet_reference(x, p):
    """Unfused pure-JAX reference (mirrors the PyTorch forward)."""
    preds = jnp.einsum('bsd,de->bse', x, p['wb']) + p['bb']
    temp_preds = p['templates'] @ p['wb'] + p['bb']
    sims = jnp.einsum('bse,te->bst', preds, temp_preds)
    h = jnp.einsum('bst,th->bsh', sims, p['wd1']) + p['bd1']
    h = jnp.where(h > 0, h, NEG_SLOPE * h)
    d = jnp.einsum('bsh,ho->bso', h, p['wd2']) + p['bd2']
    scores = jax.nn.softmax(d, axis=1)
    wm = jnp.sum(preds * scores, axis=1)
    h2 = wm @ p['wl1'] + p['bl1']
    h2 = jnp.where(h2 > 0, h2, NEG_SLOPE * h2)
    return h2 @ p['wl2'] + p['bl2']


def init_params(key, d_in, embed_dim, n_templates, hidden, n_logits):
    # TODO(synk): `base_model` is abstract in the PyTorch spec; modeled here as
    # a single Linear(d_in -> embed_dim).
    ks = jax.random.split(key, 8)
    scale = 0.1
    return {
        'templates': jax.random.normal(ks[0], (n_templates, d_in), jnp.float32),
        'wb':  scale * jax.random.normal(ks[1], (d_in, embed_dim), jnp.float32),
        'bb':  jnp.zeros((1, embed_dim), jnp.float32),
        'wd1': scale * jax.random.normal(ks[2], (n_templates, hidden), jnp.float32),
        'bd1': jnp.zeros((1, hidden), jnp.float32),
        'wd2': scale * jax.random.normal(ks[3], (hidden, 1), jnp.float32),
        'bd2': jnp.zeros((1, 1), jnp.float32),
        'wl1': scale * jax.random.normal(ks[4], (embed_dim, hidden), jnp.float32),
        'bl1': jnp.zeros((1, hidden), jnp.float32),
        'wl2': scale * jax.random.normal(ks[5], (hidden, n_logits), jnp.float32),
        'bl2': jnp.zeros((1, n_logits), jnp.float32),
    }


if __name__ == "__main__":
    B, S, D_IN, EMBED, N_TMPL, HIDDEN, N_LOGITS = 2, 8, 16, 32, 4, 32, 5

    key = jax.random.PRNGKey(0)
    k_x, k_p = jax.random.split(key)
    x = jax.random.normal(k_x, (B, S, D_IN), jnp.float32)
    params = init_params(k_p, D_IN, EMBED, N_TMPL, HIDDEN, N_LOGITS)

    # Params-only precompute: done once, not per forward.
    slab, meta = prepare_params(params)
    slab = jax.block_until_ready(slab)

    fwd = jax.jit(functools.partial(templatenet_forward, meta=meta))
    out = jax.block_until_ready(fwd(x, slab))
    ref = jax.block_until_ready(templatenet_reference(x, params))

    np.testing.assert_allclose(np.asarray(out), np.asarray(ref),
                               rtol=1e-4, atol=1e-4)
    assert out.shape == (B, N_LOGITS)
    print("KERNEL_OK")
</pallas_src>

<mosaic_0001>
module attributes {stable_mosaic.version = 11 : i64} {
  func.func @templatenet_kernel(%arg0: i32, %arg1: memref<8x16xf32, #tpu.memory_space<vmem>>, %arg2: memref<120x128xf32, #tpu.memory_space<vmem>>, %arg3: memref<8x128xf32, #tpu.memory_space<vmem>>) attributes {dimension_semantics = [#tpu.dimension_semantics<parallel>], iteration_bounds = array<i64: 2>, scalar_prefetch = 0 : i64, scratch_operands = 0 : i64, tpu.core_type = #tpu.core_type<tc>, window_params = [{transform_indices = @transform_0, window_bounds = array<i64: 8, 16>}, {pipeline_mode = #tpu.pipeline_mode<synchronous>, transform_indices = @transform_1, window_bounds = array<i64: 120, 128>}, {transform_indices = @transform_2, window_bounds = array<i64: 8, 128>}]} {
    %c0 = arith.constant 0 : index
    %c0_0 = arith.constant 0 : index
    %0 = vector.load %arg1[%c0, %c0_0] : memref<8x16xf32, #tpu.memory_space<vmem>>, vector<8x16xf32>
    %c0_1 = arith.constant 0 : index
    %c0_2 = arith.constant 0 : index
    %1 = vector.load %arg2[%c0_1, %c0_2] : memref<120x128xf32, #tpu.memory_space<vmem>>, vector<16x64xf32>
    %c16 = arith.constant 16 : index
    %c0_3 = arith.constant 0 : index
    %2 = vector.load %arg2[%c16, %c0_3] : memref<120x128xf32, #tpu.memory_space<vmem>>, vector<1x64xf32>
    %c24 = arith.constant 24 : index
    %c0_4 = arith.constant 0 : index
    %3 = vector.load %arg2[%c24, %c0_4] : memref<120x128xf32, #tpu.memory_space<vmem>>, vector<1x32xf32>
    %c32 = arith.constant 32 : index
    %c0_5 = arith.constant 0 : index
    %4 = vector.load %arg2[%c32, %c0_5] : memref<120x128xf32, #tpu.memory_space<vmem>>, vector<1x1xf32>
    %c40 = arith.constant 40 : index
    %c0_6 = arith.constant 0 : index
    %5 = vector.load %arg2[%c40, %c0_6] : memref<120x128xf32, #tpu.memory_space<vmem>>, vector<32x32xf32>
    %c72 = arith.constant 72 : index
    %c0_7 = arith.constant 0 : index
    %6 = vector.load %arg2[%c72, %c0_7] : memref<120x128xf32, #tpu.memory_space<vmem>>, vector<1x32xf32>
    %c80 = arith.constant 80 : index
    %c0_8 = arith.constant 0 : index
    %7 = vector.load %arg2[%c80, %c0_8] : memref<120x128xf32, #tpu.memory_space<vmem>>, vector<32x128xf32>
    %c112 = arith.constant 112 : index
    %c0_9 = arith.constant 0 : index
    %8 = vector.load %arg2[%c112, %c0_9] : memref<120x128xf32, #tpu.memory_space<vmem>>, vector<1x128xf32>
    %cst = arith.constant dense<0.000000e+00> : vector<8x64xf32>
    %9 = tpu.matmul %0, %1, %cst {dimension_numbers = #tpu.dot_dimension_numbers<[1], [0], [0], [1], [0, 0, 1, 1], [], []>} : vector<8x16xf32>, vector<16x64xf32>, vector<8x64xf32> -> vector<8x64xf32>
    %10 = vector.broadcast %2 : vector<1x64xf32> to vector<8x64xf32>
    %11 = arith.addf %9, %10 : vector<8x64xf32>
    %12 = vector.extract_strided_slice %11 {offsets = [0, 0], sizes = [8, 32], strides = [1, 1]} : vector<8x64xf32> to vector<8x32xf32>
    %13 = vector.extract_strided_slice %11 {offsets = [0, 32], sizes = [8, 32], strides = [1, 1]} : vector<8x64xf32> to vector<8x32xf32>
    %cst_10 = arith.constant 0.000000e+00 : f32
    %14 = vector.broadcast %cst_10 : f32 to vector<8x32xf32>
    %15 = arith.cmpf ogt, %13, %14 : vector<8x32xf32>
    %cst_11 = arith.constant 0.00999999977 : f32
    %16 = vector.broadcast %cst_11 : f32 to vector<8x32xf32>
    %17 = arith.mulf %16, %13 : vector<8x32xf32>
    %18 = arith.select %15, %13, %17 : vector<8x32xi1>, vector<8x32xf32>
    %19 = vector.broadcast %3 : vector<1x32xf32> to vector<8x32xf32>
    %20 = arith.mulf %18, %19 : vector<8x32xf32>
    %cst_12 = arith.constant dense<0.000000e+00> : vector<8xf32>
    %21 = vector.multi_reduction <add>, %20, %cst_12 [1] : vector<8x32xf32> to vector<8xf32>
    %22 = vector.shape_cast %21 : vector<8xf32> to vector<8x1xf32>
    %23 = vector.broadcast %4 : vector<1x1xf32> to vector<8x1xf32>
    %24 = arith.addf %22, %23 : vector<8x1xf32>
    %cst_13 = arith.constant dense<0xFF800000> : vector<1xf32>
    %25 = vector.multi_reduction <maximumf>, %24, %cst_13 [0] : vector<8x1xf32> to vector<1xf32>
    %26 = vector.shape_cast %25 : vector<1xf32> to vector<1x1xf32>
    %27 = vector.broadcast %26 : vector<1x1xf32> to vector<8x1xf32>
    %28 = arith.subf %24, %27 : vector<8x1xf32>
    %29 = math.exp %28 : vector<8x1xf32>
    %cst_14 = arith.constant dense<0.000000e+00> : vector<1xf32>
    %30 = vector.multi_reduction <add>, %29, %cst_14 [0] : vector<8x1xf32> to vector<1xf32>
    %31 = vector.shape_cast %30 : vector<1xf32> to vector<1x1xf32>
    %32 = vector.broadcast %31 : vector<1x1xf32> to vector<8x1xf32>
    %33 = arith.divf %29, %32 : vector<8x1xf32>
    %34 = vector.broadcast %33 : vector<8x1xf32> to vector<8x32xf32>
    %35 = arith.mulf %12, %34 : vector<8x32xf32>
    %cst_15 = arith.constant dense<0.000000e+00> : vector<32xf32>
    %36 = vector.multi_reduction <add>, %35, %cst_15 [0] : vector<8x32xf32> to vector<32xf32>
    %37 = vector.shape_cast %36 : vector<32xf32> to vector<1x32xf32>
    %cst_16 = arith.constant dense<0.000000e+00> : vector<1x32xf32>
    %38 = tpu.matmul %37, %5, %cst_16 {dimension_numbers = #tpu.dot_dimension_numbers<[1], [0], [0], [1], [0, 0, 1, 1], [], []>} : vector<1x32xf32>, vector<32x32xf32>, vector<1x32xf32> -> vector<1x32xf32>
    %39 = arith.addf %38, %6 : vector<1x32xf32>
    %cst_17 = arith.constant 0.000000e+00 : f32
    %40 = vector.broadcast %cst_17 : f32 to vector<1x32xf32>
    %41 = arith.cmpf ogt, %39, %40 : vector<1x32xf32>
    %cst_18 = arith.constant 0.00999999977 : f32
    %42 = vector.broadcast %cst_18 : f32 to vector<1x32xf32>
    %43 = arith.mulf %42, %39 : vector<1x32xf32>
    %44 = arith.select %41, %39, %43 : vector<1x32xi1>, vector<1x32xf32>
    %cst_19 = arith.constant dense<0.000000e+00> : vector<1x128xf32>
    %45 = tpu.matmul %44, %7, %cst_19 {dimension_numbers = #tpu.dot_dimension_numbers<[1], [0], [0], [1], [0, 0, 1, 1], [], []>} : vector<1x32xf32>, vector<32x128xf32>, vector<1x128xf32> -> vector<1x128xf32>
    %46 = arith.addf %45, %8 : vector<1x128xf32>
    %47 = vector.shape_cast %46 : vector<1x128xf32> to vector<1x128xf32>
    %48 = vector.broadcast %47 : vector<1x128xf32> to vector<8x128xf32>
    %c0_20 = arith.constant 0 : index
    %c0_21 = arith.constant 0 : index
    %49 = vector.load %arg3[%c0_20, %c0_21] : memref<8x128xf32, #tpu.memory_space<vmem>>, vector<8x128xf32>
    tpu.vector_store %arg3[%c0_20, %c0_21], %48 {strides = array<i32>} : memref<8x128xf32, #tpu.memory_space<vmem>>, vector<8x128xf32>,
    return
  }
  func.func @transform_0(%arg0: i32) -> (i32, i32) {
    %c0_i32 = arith.constant 0 : i32
    %c0_i32_0 = arith.constant 0 : i32
    return %arg0, %c0_i32 : i32, i32
  }
  func.func @transform_1(%arg0: i32) -> (i32, i32) {
    %c0_i32 = arith.constant 0 : i32
    %c0_i32_0 = arith.constant 0 : i32
    %c0_i32_1 = arith.constant 0 : i32
    return %c0_i32, %c0_i32_0 : i32, i32
  }
  func.func @transform_2(%arg0: i32) -> (i32, i32) {
    %c0_i32 = arith.constant 0 : i32
    %c0_i32_0 = arith.constant 0 : i32
    return %arg0, %c0_i32 : i32, i32
  }
}

</mosaic_0001>

<bundles_post_ra>
// kernel: templatenet_forward.1
= control target key start
LH: loop header
LB: loop body
LE: loop exit
PB: predicated region body
PF: predicated region fallthrough
CT: control target
= control target key end

     0   :  { %7 = vsyncpa [#allocation3], 0  ;;  %s968_s0 = inlined_call_operand.hbm [shape: f32[16,16], index: 0, kind: input, shape index: {}]   ;;  %s969_s1 = inlined_call_operand.hbm [shape: f32[120,128], index: 1, kind: input, shape index: {}]   ;;  %s970_s2 = inlined_call_operand.vmem [shape: f32[16,128], index: 2, kind: output, shape index: {}]  }
   0x1   :  { %9 = vsyncpa [#allocation3 + $0x1], 0 }
   0x2   :  { %10 = vsyncpa [#allocation5], 0  ;;  %s817_s9 = smov 0   ;;  %s819_s10 = smov 0  }
   0x3   :  { %s821_s11 = smov 0   ;;  %s823_s12 = smov 0  }
   0x4 LB: > { %s836_s13 = sadd.s32 4294967295, %s790_s12   ;;  %p36_p0 = scmp.ne.s32.totalorder %s782_s10, %s778_s9  ;;  %s790_s12 = sphi %s823_s12, %s985_s12   ;;  %s786_s11 = sphi %s821_s11, %s984_s11   ;;  %s782_s10 = sphi %s819_s10, %s983_s10   ;;  %s778_s9 = sphi %s817_s9, %s982_s9  }
   0x5   : > { %p971_p1 = scmp.eq.s32.totalorder %s836_s13, 0  ;;  %p556_p2 = scmp.ge.s32.totalorder %s790_s12, 1 }
   0x6   : > { %p94_p3 = scmp.lt.s32.totalorder %s790_s12, 3  ;;  %s792_s16 = smov [#allocation4]  }
   0x7   : > { %p844_p4 = por %p971_p1, %p36_p0  ;;  %s106_s17 = sshll.u32 %s792_s16, 4  ;;  %s107_s17 = int_to_ptr.vmem [resolvable:$true] %s106_s17 }
   0x8   : > { %p848_p5 = pnand %p556_p2, %p94_p3  ;;  %s861_s19 = sadd.s32 1, %s790_s12  }
   0x9   : > { %s974_s14 = scalar_select %p844_p4, 1, 0 }
   0xa   : > { %s975_s15 = scalar_select %p848_p5, 1, 0 }
   0xb   : > { %p636_p6 = pneg %p848_p5  ;;  %s23_s20 = sadd.s32 1, %s786_s11 }
   0xc   : > { %s20_s21 = ssub.s32 %s790_s12, %s861_s19  ;;  %s694_s24 = scalar_lea.hbm %s969_s1, 1920 }
   0xd   : > { %p856_p7 = pnand %p636_p6, %p971_p1  ;;  %p695_p8 = scmp.ne.s32.totalorder %s969_s1, %s694_s24 }
   0xe   : > { %p701_p12 = scmp.lt.u32.totalorder %s694_s24, %s969_s1 }
   0xf   : > { %p696_p9 = pneg %p856_p7 }
  0x11   : > { %p697_p10 = pnand %p696_p9, %p695_p8 }
  0x13   : > { %p698_p11 = pneg %p697_p10 }
  0x15   : > { %p703_p13 = pnand %p701_p12, %p698_p11 }
  0x17   : > { %706 = shalt.err (!%p703_p13)
}
  0x18   : > { %s707_s29 = scalar_lea.vmem %s107_s17, 1920  ;;  %p715_p6 = scmp.lt.s32.totalorder %s107_s17, %s107_s17 }
  0x19   : > { %p708_p0 = scmp.ne.s32.totalorder %s107_s17, %s707_s29  ;;  %p716_p1 = scmp.lt.s32.totalorder %s707_s29, %s707_s29 }
  0x1b   : > { %p710_p2 = pnand %p708_p0, %p696_p9  ;;  %p717_p4 = por %p716_p1, %p715_p6 }
  0x1d   : > { %p711_p3 = pneg %p710_p2 }
  0x1f   : > { %p718_p5 = pnand %p717_p4, %p711_p3 }
  0x21   : > { %721 = shalt.err (!%p718_p5)
}
  0x22   : > { %s793_s30 = smov 128   ;;  %s794_s3 = smov 8  }
  0x23   : > { %639 = dma.hbm_to_vmem [thread:$0]  (!%p856_p7), %s969_s1, 1920, %s107_s17, [#allocation5], %s793_s30, %s793_s30, %s794_s3  }
  0x24   : > { %p21_p8 = scmp.eq.s32.totalorder %s20_s21, 0  ;;  %p30_p9 = scmp.ne.s32.totalorder %s786_s11, %s782_s10 }
  0x25   : > { %p31_p1 = scmp.eq.s32.totalorder %s790_s12, 0  ;;  %p645_p4 = scmp.lt.s32.totalorder %s790_s12, 2 }
  0x26   : > { %s887_s6 = scalar_select %p21_p8, %s786_s11, %s23_s20  }
  0x27   : > { %p32_p5 = por %p31_p1, %p30_p9  ;;  %s120_s7 = sand.u32 1, %s786_s11  }
  0x28   : > { %s559_s8 = sshll.u32 %s120_s7, 3  ;;  %s560_s9 = sshll.u32 %s790_s12, 7 }
  0x29   : > { %s894_s23 = scalar_lea.hbm %s968_s0, %s560_s9  ;;  %s124_s17 = scalar_lea.vmem [#allocation2], %s559_s8 }
  0x2a   : > { %s131_s18 = sshll.u32 %s124_s17, 4  ;;  %p898_p7 = pnand %p645_p4, %p32_p5  ;;  %s896_s18 = int_to_ptr.vmem [resolvable:$true] %s131_s18 }
  0x2b   : > { %s121_s12 = scalar_lea.sflag [#allocation3], %s120_s7  ;;  %s722_s21 = scalar_lea.hbm %s894_s23, 128 }
  0x2c   : > { %p723_p10 = scmp.ne.s32.totalorder %s894_s23, %s722_s21  ;;  %p724_p11 = pneg %p898_p7 }
  0x2d   : > { %s727_s26 = scalar_lea.hbm %s968_s0, 256  ;;  %p728_p0 = scmp.lt.u32.totalorder %s894_s23, %s968_s0 }
  0x2e   : > { %p725_p12 = pnand %p724_p11, %p723_p10  ;;  %p729_p2 = scmp.lt.u32.totalorder %s727_s26, %s722_s21 }
  0x2f   : > { %p731_p6 = scmp.lt.u32.totalorder %s722_s21, %s894_s23 }
  0x30   : > { %p726_p13 = pneg %p725_p12  ;;  %p730_p3 = por %p729_p2, %p728_p0 }
  0x32   : > { %p732_p8 = por %p731_p6, %p730_p3 }
  0x34   : > { %p733_p9 = pnand %p732_p8, %p726_p13 }
  0x36   : > { %736 = shalt.err (!%p733_p9)
}
  0x37   : > { %s737_s29 = scalar_lea.vmem %s896_s18, 128  ;;  %s795_s30 = smov [#allocation2]  }
  0x38   : > { %p738_p1 = scmp.ne.s32.totalorder %s896_s18, %s737_s29  ;;  %s742_s3 = sshll.u32 %s795_s30, 4  ;;  %s743_s3 = int_to_ptr.vmem [resolvable:$false] %s742_s3 }
  0x39   : > { %s744_s4 = scalar_lea.vmem %s743_s3, 256  ;;  %p745_p10 = scmp.lt.s32.totalorder %s896_s18, %s743_s3 }
  0x3a   : > { %p740_p4 = pnand %p738_p1, %p724_p11  ;;  %p746_p12 = scmp.lt.s32.totalorder %s744_s4, %s737_s29 }
  0x3c   : > { %p741_p5 = pneg %p740_p4  ;;  %p747_p0 = por %p746_p12, %p745_p10 }
  0x3e   : > { %p748_p2 = pnand %p747_p0, %p741_p5 }
  0x40   : > { %751 = shalt.err (!%p748_p2)
}
  0x41   : > { %643 = dma.hbm_to_vmem [thread:$0]  (!%p898_p7), %s894_s23, 128, %s896_s18, %s121_s12  }
  0x42   : > { %p978_p13 = scmp.ne.s32.totalorder %s975_s15, 0 }
  0x43   : > { %s142_s5 = sand.u32 (!%p978_p13), 1, %s782_s10   ;;  %p979_p11 = scmp.ne.s32.totalorder (!%p978_p13), %s974_s14, 0 }
  0x44   : > { %140 = sbr.rel (%p978_p13) target bundleno = 1195 (0x4ab), region = 28  ;;  %s562_s7 = sshll.u32 (!%p978_p13), %s142_s5, 3 }
  0x45   : > { %s143_s8 = scalar_lea.sflag (!%p978_p13), [#allocation3], %s142_s5  ;;  %s146_s9 = scalar_lea.vmem (!%p978_p13), [#allocation2], %s562_s7 }
  0x4b   : > { %769 = dma.done.wait (%p979_p11), %s143_s8, 128  }
  0x4c   : > { %771 = vsyncadd (%p979_p11), %s143_s8, 4294967168  ;;  %p980_p3 = scmp.eq.s32.totalorder %s836_s13, 0 }
  0x4e   : > { %773 = dma.done.wait (%p980_p3), [#allocation5], 1920   ;;  %p981_p6 = pmov %p980_p3 }
  0x4f   : > { %v796_v0 = vmov 0.0|0.0   ;;  %vm797_vm0 = vmmov 0   ;;  %v798_v1 = vmov 0.0   ;;  %v175_v2 = vld [vmem:[#allocation4] sm:$0xff]  ;;  %v176_v3 = vld [vmem:[#allocation4 + $0x8] sm:$0xff]  ;;  %s799_s14 = smov 32  }
  0x50   : > { %775 = vsyncadd (%p981_p6), [#allocation5], 4294965376  ;;  %615 = vmatprep.subr.bf16.mxu0 %v796_v0  ;;  %590 = vmatprep.mubr.msk.f32.mxu0 %vm797_vm0, %v798_v1  ;;  %v616_v4 = vpack.c.bf16 %v176_v3, %v175_v2  ;;  %v567_v5 = vld [vmem:[#allocation4 + $0x18] ss:$0 sm:$0xff]  ;;  %vm194_vm1 = vcmask 130048   ;;  %s800_s15 = smov 96   ;;  %v475_v3 = vlaneseq }
  0x51   : > { %618 = vmatprep.subr.bf16.mxu1 %v796_v0  ;;  %601 = vmatprep.mubr.msk.f32.mxu1 %vm797_vm0, %v798_v1  ;;  %v174_v6 = vld [vmem:[%s146_s9] sm:$0xff]  ;;  %vm284_vm3 = vcmask 261120   ;;  %v801_v17 = vmov 0   ;;  %v568_v18 = vld [vmem:[#allocation4 + $0x20] ss:$0 sm:$0xff]  ;;  %vm293_vm4 = vcmask 7168  }
  0x52   : > { %276 = vrot.lane.b32.xlu0 %v567_v5, %s799_s14  ;;  %617 = vmatpush3.bf16.msra.mxu0 %v616_v4  ;;  %v565_v7 = vld [vmem:[#allocation4 + $0x10] ss:$0 sm:$0xff]  ;;  %v180_v40 = vld [vmem:[#allocation4 + $0x28] sm:$0xff]  ;;  %v182_v43 = vld [vmem:[#allocation4 + $0x38] sm:$0xff]  ;;  %p170_p7 = scmp.lt.s32.totalorder %s836_s13, 1  ;;  %v476_v4 = vshrl.u32 %v475_v3, 7 }
  0x53   : > { %624 = vmatprep.subr.bf16.mxu0 %v796_v0  ;;  %688 = vset.pattern.permute.xlu1 %v801_v17  ;;  %v181_v41 = vld [vmem:[#allocation4 + $0x30] sm:$0xff]  ;;  %v183_v44 = vld [vmem:[#allocation4 + $0x40] sm:$0xff]  ;;  %v186_v47 = vld [vmem:[#allocation4 + $0x58] sm:$0xff] }
  0x54   : > { %689 = vset.pattern.permute.xlu0 %v801_v17  ;;  %v619_v42 = vpack.c.bf16 %v181_v41, %v180_v40  ;;  %v622_v45 = vpack.c.bf16 %v183_v44, %v182_v43  ;;  %v185_v46 = vld [vmem:[#allocation4 + $0x50] sm:$0xff]  ;;  %v187_v58 = vld [vmem:[#allocation4 + $0x60] sm:$0xff]  ;;  %v188_v59 = vld [vmem:[#allocation4 + $0x68] sm:$0xff]  ;;  %s987_s13 = smov (!%p170_p7, %s836_s13), 1 }
  0x55   : > { %591 = vmatmul.mubr.msk.f32.vlgmr.msra.gmra.mrb[0].mxu0 %vm194_vm1, %v174_v6  ;;  %v625_v48 = vpack.c.bf16 %v186_v47, %v185_v46  ;;  %v628_v60 = vpack.c.bf16 %v188_v59, %v187_v58  ;;  %v184_v61 = vld [vmem:[#allocation4 + $0x48] sm:$0x1]  ;;  %v189_v5 = vld [vmem:[#allocation4 + $0x70] sm:$0x1]  ;;  %s564_s16 = sshll.u32 %s987_s13, 3  ;;  %v477_v6 = vsub.s32 0, %v476_v4 }
  0x56   : > { %612 = vmatprep.mubr.msk.f32.mxu0 %vm797_vm0, %v798_v1  ;;  %620 = vmatpush3.bf16.msra.mxu1 %v619_v42  ;;  %s173_s17 = scalar_lea.vmem %s970_s2, %s564_s16 }
  0x57   : > { %621 = vmatprep.subr.bf16.mxu1 %v796_v0  ;;  %626 = vmatpush3.bf16.msra.mxu0 %v625_v48 }
  0x58   : > { %627 = vmatprep.subr.bf16.mxu0 %v796_v0 }
  0x5a   : > { %623 = vmatpush3.bf16.msra.mxu1 %v622_v45 }
  0x5b   : > { %629 = vmatpush3.bf16.msra.mxu0 %v628_v60 }
  0xc4   : > { %v277_v11 = vpop.permute.xlu0 %276 }
 0x128   : > { %v264_v8 = vpop.f32.mrb[0].mxu0 }
 0x129   : > { %v265_v9 = vadd.f32 %v565_v7, %v264_v8  ;;  %v592_v10 = vpop.f32.mrb[1].mxu0 }
 0x12b   : > { %vm268_vm2 = vcmp.gt.f32.partialorder %v265_v9, 0.0  ;;  %v269_v12 = vmul.f32 0.01, %v265_v9 }
 0x12d   : > { %v270_v13 = vsel %vm268_vm2, %v265_v9, %v269_v12 }
 0x12e   : > { %v279_v14 = vmul.f32 %v277_v11, %v270_v13 }
 0x130   : > { %281 = vrot.lane.b32.xlu0 %v279_v14, %s800_s15 }
 0x1a2   : > { %v282_v15 = vpop.permute.xlu0 %281 }
 0x1a3   : > { %v285_v16 = vsel %vm284_vm3, %v282_v15, 0.0 }
 0x1a4   : > { %286 = vadd.xlane.f32.xlu1 %v285_v16 }
 0x231   : > { %v287_v19 = vpop.xlane.xlu1 %286 }
 0x232   : > { %v292_v20 = vadd.f32 %v568_v18, %v287_v19 }
 0x234   : > { %v294_v21 = vsel %vm293_vm4, %v292_v20, -inf }
 0x235   : > { %v295_v22 = vrot.slane %v294_v21, 4 }
 0x237   : > { %v296_v23 = vmax.f32 %v294_v21, %v295_v22 }
 0x239   : > { %v297_v24 = vrot.slane %v296_v23, 2 }
 0x23b   : > { %v298_v25 = vmax.f32 %v296_v23, %v297_v24 }
 0x23d   : > { %v299_v26 = vrot.slane %v298_v25, 1 }
 0x23f   : > { %v300_v27 = vmax.f32 %v298_v25, %v299_v26 }
 0x241   : > { %v301_v28 = vsub.f32 %v292_v20, %v300_v27 }
 0x243   : > { %v302_v29 = vmul.f32 1.442695, %v301_v28 }
 0x245   : > { %690 = vpow2.f32 %v302_v29 }
 0x24f   : > { %v691_v30 = vpop.eup %690 }
 0x250   : > { %v304_v31 = vsel %vm293_vm4, %v691_v30, 0.0 }
 0x251   : > { %v305_v32 = vrot.slane %v304_v31, 4 }
 0x253   : > { %v306_v33 = vadd.f32 %v305_v32, %v304_v31 }
 0x255   : > { %v307_v34 = vrot.slane %v306_v33, 2 }
 0x257   : > { %v308_v35 = vadd.f32 %v307_v34, %v306_v33 }
 0x259   : > { %v309_v36 = vrot.slane %v308_v35, 1 }
 0x25b   : > { %v310_v37 = vadd.f32 %v309_v36, %v308_v35 }
 0x25d   : > { %692 = vrcp.f32 %v310_v37 }
 0x267   : > { %v693_v38 = vpop.eup %692 }
 0x268   : > { %v312_v39 = vmul.f32 %v693_v38, %v691_v30 }
 0x26a   : > { %315 = vperm.xlu1 %688, %v312_v39  }
 0x2e9   : > { %v316_v49 = vpop.permute.xlu1 %315 }
 0x2ea   : > { %v318_v50 = vmul.f32 %v316_v49, %v265_v9 }
 0x2ec   : > { %v319_v51 = vsel %vm284_vm3, %v318_v50, 0.0 }
 0x2ed   : > { %v320_v52 = vrot.slane %v319_v51, 4 }
 0x2ef   : > { %v321_v53 = vadd.f32 %v320_v52, %v319_v51 }
 0x2f1   : > { %v322_v54 = vrot.slane %v321_v53, 2 }
 0x2f3   : > { %v323_v55 = vadd.f32 %v322_v54, %v321_v53 }
 0x2f5   : > { %v324_v56 = vrot.slane %v323_v55, 1 }
 0x2f7   : > { %v325_v57 = vadd.f32 %v324_v56, %v323_v55 }
 0x2f9   : > { %602 = vmatmul.mubr.msk.f32.vlgmr.msra.gmra.mrb[0].mxu1 %vm284_vm3, %v325_v57 }
 0x3cc   : > { %v395_v62 = vpop.f32.mrb[0].mxu1 }
 0x3cd   : > { %v396_v63 = vadd.f32 %v395_v62, %v184_v61  ;;  %v603_v0 = vpop.f32.mrb[1].mxu1 }
 0x3cf   : > { %vm399_vm5 = vcmp.gt.f32.partialorder %v396_v63, 0.0  ;;  %v400_v1 = vmul.f32 0.01, %v396_v63 }
 0x3d1   : > { %v401_v2 = vsel %vm399_vm5, %v396_v63, %v400_v1 }
 0x3d2   : > { %613 = vmatmul.mubr.msk.f32.vlgmr.msra.gmra.mrb[2].mxu0 %vm284_vm3, %v401_v2 }
 0x4a5   : > { %v471_v7 = vpop.f32.mrb[2].mxu0 }
 0x4a6   : > { %v472_v8 = vadd.f32 %v471_v7, %v189_v5  ;;  %v614_v9 = vpop.f32.mrb[3].mxu0 }
 0x4a8   : > { %v478_v10 = vrot.slane %v472_v8, %v477_v6 }
 0x4aa   : > { %479 = vst [vmem:[%s173_s17] sm:$0xff] %v478_v10 }
 0x4ab PF: > { %p13_p8 = scmp.ge.s32.totalorder %s861_s19, 4   ;;  %s982_s9 = smov %s782_s10 }
 0x4ac   : > { %s983_s10 = smov %s786_s11  ;;  %s984_s11 = smov %s887_s6 }
 0x4ad   : > { %s985_s12 = smov %s861_s19  ;;  %15 = sbr.rel (!%p13_p8) target bundleno = 4 (0x4), region = 72 }
 0x4b4   :  { %499 = vsyncpa [#allocation3], 1 }
 0x4b5   :  { %501 = vsyncpa [#allocation3 + $0x1], 1 }
 0x4b6   :  { %502 = vsyncpa [#allocation5], 1 }

</bundles_post_ra>
